<compile_context>
chip_gen: v5e
topology: v5e:2x2
jax: 0.10.0
libtpu: 0.0.40
codegen_flags: <defaults>
</compile_context>

<pallas_src>
import jax
import jax.numpy as jnp
from jax.experimental import pallas as pl
from jax.experimental.pallas import tpu as pltpu

_LANE = 128
_TARGET_BLOCK_BYTES = 4 * 1024 * 1024     # per-block target; x4 (in+out, dbl-buf) = 16 MiB
_VMEM_LIMIT_BYTES = 32 * 1024 * 1024      # safe on v5e/v6e (128 MiB) and v7x (64 MiB)
_RAGGED_BLOCK_ELEMS = 1 << 20             # multiple of 128; lane-tiled ragged blocks


def _identity_kernel(x_ref, o_ref):
    # Pure copy of the current VMEM tile.
    o_ref[...] = x_ref[...]


def _sublane(dtype) -> int:
    # Native packed sublane count: 8 for 4-byte, 16 for 2-byte, 32 for 1-byte.
    itemsize = jnp.dtype(dtype).itemsize
    return max(8, 32 // max(1, itemsize))


def _pick_cols(n: int) -> int:
    # Widest lane-dense column count that divides n (unmasked full-width vst,
    # long DMA descriptors).  Prefers >= 512 lanes when n allows it.
    for cols in (8192, 4096, 2048, 1024, 512, 256, 128):
        if n % cols == 0:
            return cols
    return _LANE


def _copy_call(x2d: jax.Array, block_shape, grid, index_map) -> jax.Array:
    rows, cols = x2d.shape
    itemsize = jnp.dtype(x2d.dtype).itemsize
    return pl.pallas_call(
        _identity_kernel,
        out_shape=jax.ShapeDtypeStruct((rows, cols), x2d.dtype),
        grid_spec=pltpu.PrefetchScalarGridSpec(
            num_scalar_prefetch=0,
            grid=grid,
            in_specs=[pl.BlockSpec(block_shape, index_map)],
            out_specs=pl.BlockSpec(block_shape, index_map),
        ),
        compiler_params=pltpu.CompilerParams(
            dimension_semantics=("parallel",),
            vmem_limit_bytes=_VMEM_LIMIT_BYTES,
        ),
        cost_estimate=pl.CostEstimate(
            flops=0,
            transcendentals=0,
            bytes_accessed=2 * rows * cols * itemsize,
        ),
    )(x2d)


def identity(x: jax.Array, copy: bool = False) -> jax.Array:
    """torch.nn.Identity forward: return x.

    Default (copy=False) is a true no-op — zero data movement, no kernel —
    matching nn.Identity, which returns the very same tensor. Set copy=True
    to force a fresh output buffer via a Pallas HBM-roofline tiled copy.
    """
    if not copy:
        return x  # no-kernel fast path: zero FLOPs, zero bytes

    n = x.size
    if n == 0:
        return x

    flat = x.reshape(-1)
    itemsize = jnp.dtype(x.dtype).itemsize

    if n % _LANE == 0:
        # Lane-aligned: metadata-only reshape into a wide 2D slab, row-tiled.
        cols = _pick_cols(n)
        rows = n // cols
        sub = _sublane(x.dtype)
        rows_per_block = max(
            sub, (_TARGET_BLOCK_BYTES // (cols * itemsize)) // sub * sub
        )
        block_rows = min(rows, rows_per_block)
        # v7x megacore: large copies should present >= 2 parallel grid steps
        # so both TensorCores share the work.
        if (rows * cols * itemsize >= 2 * 1024 * 1024
                and pl.cdiv(rows, block_rows) < 2
                and rows >= 2 * sub):
            block_rows = max(sub, ((rows + 1) // 2) // sub * sub)
        grid = (pl.cdiv(rows, block_rows),)
        out2d = _copy_call(
            flat.reshape(rows, cols), (block_rows, cols), grid, lambda i: (i, 0)
        )
        return out2d.reshape(x.shape)

    # Ragged size: no jnp.pad / slice (each would add a full extra HBM pass).
    # Small n -> single full-array block (exempt from the (8,128) constraint);
    # large n -> lane-tiled blocks, Pallas masks the partial tail block.
    x2d = flat.reshape(1, n)
    if n <= _RAGGED_BLOCK_ELEMS:
        block_cols = n
    else:
        block_cols = _RAGGED_BLOCK_ELEMS  # multiple of 128
    grid = (pl.cdiv(n, block_cols),)
    out2d = _copy_call(x2d, (1, block_cols), grid, lambda i: (0, i))
    return out2d.reshape(x.shape)


if __name__ == "__main__":
    key = jax.random.PRNGKey(0)
    # Small NCHW-style input consistent with a typical module input.
    x = jax.random.normal(key, (2, 4, 16, 16), dtype=jnp.float32)

    y_noop = identity(x)              # default path: true identity, no kernel
    y_copy = identity(x, copy=True)   # Pallas tiled-copy path (fresh buffer)

    # Also exercise the ragged (non-lane-aligned) copy path.
    x_ragged = jax.random.normal(jax.random.PRNGKey(1), (3, 5, 7), dtype=jnp.float32)
    y_ragged = identity(x_ragged, copy=True)

    jax.block_until_ready((y_noop, y_copy, y_ragged))

    assert y_noop.shape == x.shape and y_noop.dtype == x.dtype
    assert bool(jnp.array_equal(y_noop, x))
    assert y_copy.shape == x.shape and y_copy.dtype == x.dtype
    assert bool(jnp.array_equal(y_copy, x))
    assert y_ragged.shape == x_ragged.shape and y_ragged.dtype == x_ragged.dtype
    assert bool(jnp.array_equal(y_ragged, x_ragged))
    print("KERNEL_OK")
</pallas_src>

<mosaic_0001>
module attributes {stable_mosaic.version = 11 : i64} {
  func.func @_identity_kernel(%arg0: i32, %arg1: memref<1x2048xf32, #tpu.memory_space<vmem>>, %arg2: memref<1x2048xf32, #tpu.memory_space<vmem>>) attributes {dimension_semantics = [#tpu.dimension_semantics<parallel>], iteration_bounds = array<i64: 1>, scalar_prefetch = 0 : i64, scratch_operands = 0 : i64, tpu.core_type = #tpu.core_type<tc>, window_params = [{transform_indices = @transform_0, window_bounds = array<i64: 1, 2048>}, {transform_indices = @transform_1, window_bounds = array<i64: 1, 2048>}]} {
    %c0 = arith.constant 0 : index
    %c0_0 = arith.constant 0 : index
    %0 = vector.load %arg1[%c0, %c0_0] : memref<1x2048xf32, #tpu.memory_space<vmem>>, vector<1x2048xf32>
    %c0_1 = arith.constant 0 : index
    %c0_2 = arith.constant 0 : index
    %1 = vector.load %arg2[%c0_1, %c0_2] : memref<1x2048xf32, #tpu.memory_space<vmem>>, vector<1x2048xf32>
    tpu.vector_store %arg2[%c0_1, %c0_2], %0 {strides = array<i32>} : memref<1x2048xf32, #tpu.memory_space<vmem>>, vector<1x2048xf32>,
    return
  }
  func.func @transform_0(%arg0: i32) -> (i32, i32) {
    %c0_i32 = arith.constant 0 : i32
    %c0_i32_0 = arith.constant 0 : i32
    return %arg0, %c0_i32 : i32, i32
  }
  func.func @transform_1(%arg0: i32) -> (i32, i32) {
    %c0_i32 = arith.constant 0 : i32
    %c0_i32_0 = arith.constant 0 : i32
    return %arg0, %c0_i32 : i32, i32
  }
}

</mosaic_0001>

<bundles_post_ra>
// kernel: tpu_custom_call.1
= control target key start
LH: loop header
LB: loop body
LE: loop exit
PB: predicated region body
PF: predicated region fallthrough
CT: control target
= control target key end

     0   :  { %6 = vsyncpa [#allocation3], 0  ;;  %s116_s0 = inlined_call_operand.hbm [shape: f32[1,2048], index: 0, kind: input, shape index: {}]   ;;  %s117_s1 = inlined_call_operand.hbm [shape: f32[1,2048], index: 1, kind: output, shape index: {}]  }
   0x1   :  { %7 = vsyncpa [#allocation4], 0  ;;  %s13_s8 = sshll.u32 %s116_s0, 4  ;;  %s98_s9 = smov [#allocation2]   ;;  %s14_s8 = int_to_ptr.hbm [resolvable:$true] %s13_s8 }
   0x2   :  { %s15_s10 = sshll.u32 %s98_s9, 4  ;;  %s16_s10 = int_to_ptr.vmem [resolvable:$true] %s15_s10 }
   0x3   :  { %18 = dma.hbm_to_vmem [thread:$0]  %s14_s8, 256, %s16_s10, [#allocation3]  }
   0x4   :  { %94 = dma.done.wait [#allocation3], 256  }
   0x5   :  { %95 = vsyncadd [#allocation3], 4294967040  ;;  %s99_s11 = smov [#allocation5]   ;;  %s34_s15 = sshll.u32 %s117_s1, 4  ;;  %v23_v0 = vld [vmem:[#allocation2] sm:$0xff]  ;;  %v24_v1 = vld [vmem:[#allocation2 + $0x8] sm:$0xff]  ;;  %s35_s15 = int_to_ptr.hbm [resolvable:$true] %s34_s15 }
   0x6   :  { %s32_s12 = sshll.u32 %s99_s11, 4  ;;  %25 = vst [vmem:[#allocation5] sm:$0xff] %v23_v0  ;;  %s33_s12 = int_to_ptr.vmem [resolvable:$true] %s32_s12 }
   0x7   :  { %26 = vst [vmem:[#allocation5 + $0x8] sm:$0xff] %v24_v1 }
   0x8   :  { %37 = dma.vmem_to_hbm [thread:$0]  %s33_s12, 256, %s35_s15, [#allocation4]  }
   0x9   :  { %96 = dma.done.wait [#allocation4], 256  }
   0xa   :  { %97 = vsyncadd [#allocation4], 4294967040 }
   0xb   :  { %42 = vsyncpa [#allocation3], 1 }
   0xc   :  { %43 = vsyncpa [#allocation4], 1 }

</bundles_post_ra>
